<compile_context>
chip_gen: v7x
topology: tpu7x:2x2x1
jax: 0.10.0
libtpu: 0.0.40
codegen_flags: <defaults>
</compile_context>

<pallas_src>
import jax
import jax.numpy as jnp
from jax.experimental import pallas as pl
from jax.experimental.pallas import tpu as pltpu

EMBED_DIM = 32
HIDDEN_DIM = 72          # logical hidden width (torch module)
HID_PAD = 128            # padded hidden width: full-vreg lanes, native MXU K
OUT_DIM = 216
BN_EPS = 1e-5

# Per-step working set is ~1.2 MiB at tile_b=256; 32 MiB leaves ample double-buffer
# headroom and is safe on every chip (raises v5e's 16 MiB default, matches v6e/v7x).
VMEM_LIMIT_BYTES = 32 * 1024 * 1024


def _softplus(x):
    # torch.nn.functional.softplus (beta=1, threshold=20). exp overflow to +inf is
    # masked by the where branch (no NaN), so no inner clamp is needed.
    return jnp.where(x > 20.0, x, jnp.log1p(jnp.exp(x)))


def _accumulate_bn_stats(h, ref_ref, sd_ref, sdd_ref):
    """Shifted sum / sum-of-squares accumulation for training-mode BN statistics.

    The first tile's per-feature mean is used as the shift, so the final
    var = E[(h-ref)^2] - E[h-ref]^2 has E[h-ref] ~ 0 and no catastrophic
    cancellation.  ref_ref/sd_ref/sdd_ref are resident (1, HID_PAD) accumulators
    (constant output block index across the grid).
    """
    @pl.when(pl.program_id(0) == 0)
    def _():
        ref_ref[...] = jnp.mean(h, axis=0, keepdims=True)
        sd_ref[...] = jnp.zeros_like(sd_ref)
        sdd_ref[...] = jnp.zeros_like(sdd_ref)

    d = h - ref_ref[...]
    sd_ref[...] += jnp.sum(d, axis=0, keepdims=True)
    sdd_ref[...] += jnp.sum(d * d, axis=0, keepdims=True)


def bn1_stats_kernel(x_ref, w1_ref, ref_ref, sd_ref, sdd_ref):
    # fc1 (bias cancelled by training-mode BN), accumulate BN1 statistics.
    h1 = jnp.dot(x_ref[...], w1_ref[...], preferred_element_type=jnp.float32)
    _accumulate_bn_stats(h1, ref_ref, sd_ref, sdd_ref)


def bn2_stats_kernel(x_ref, w1_ref, s1_ref, t1_ref, w2_ref, ref_ref, sd_ref, sdd_ref):
    # Recompute fc1 (cheap, K=32), apply fused BN1 + relu, fc2, accumulate BN2 stats.
    h1 = jnp.dot(x_ref[...], w1_ref[...], preferred_element_type=jnp.float32)
    h1 = jnp.maximum(h1 * s1_ref[...] + t1_ref[...], 0.0)
    h2 = jnp.dot(h1.astype(w2_ref.dtype), w2_ref[...], preferred_element_type=jnp.float32)
    _accumulate_bn_stats(h2, ref_ref, sd_ref, sdd_ref)


def apply_kernel(x_ref, w1_ref, s1_ref, t1_ref, w2_ref, s2_ref, t2_ref,
                 w3_ref, b3_ref, o_ref):
    # Fully fused apply: fc1 + BN1 + relu + fc2 + BN2 + relu + fc3 + softplus.
    h1 = jnp.dot(x_ref[...], w1_ref[...], preferred_element_type=jnp.float32)
    h1 = jnp.maximum(h1 * s1_ref[...] + t1_ref[...], 0.0)
    h2 = jnp.dot(h1.astype(w2_ref.dtype), w2_ref[...], preferred_element_type=jnp.float32)
    h2 = jnp.maximum(h2 * s2_ref[...] + t2_ref[...], 0.0)
    out = jnp.dot(h2.astype(w3_ref.dtype), w3_ref[...], preferred_element_type=jnp.float32)
    out = out + b3_ref[...]
    o_ref[...] = _softplus(out).astype(o_ref.dtype)


def _scale_shift(ref, sd, sdd, gamma, beta, n):
    """Fold BN statistics into a single per-feature scale/shift (one mul + one add)."""
    inv_n = 1.0 / n
    mean_d = sd * inv_n
    mean = ref + mean_d
    var = jnp.maximum(sdd * inv_n - mean_d * mean_d, 0.0)
    scale = gamma * jax.lax.rsqrt(var + BN_EPS)
    shift = beta - mean * scale
    return scale, shift


def prediction_module(x, kp, *, tile_b=256, out_dtype=jnp.float32):
    """x: (B, EMBED_DIM). Returns (B, OUT_DIM) in out_dtype.

    tile_b rows per grid step (256-512 recommended on v6e/v7x). B must be a
    multiple of tile_b.
    """
    B = x.shape[0]
    if B % tile_b:
        # TODO(synk): mask the ragged last tile out of the BN statistics instead of
        # requiring divisibility.
        raise ValueError(f"batch {B} must be a multiple of tile_b={tile_b}")
    nt = B // tile_b

    mm_dtype = kp["w1"].dtype
    x = x.astype(mm_dtype)          # cast before the call -> half-width x DMA for bf16
    itemsize = jnp.dtype(mm_dtype).itemsize
    w_bytes = (EMBED_DIM * HID_PAD + HID_PAD * HID_PAD + HID_PAD * OUT_DIM) * itemsize

    x_spec = pl.BlockSpec((tile_b, EMBED_DIM), lambda i: (i, 0))
    stat_spec = pl.BlockSpec((1, HID_PAD), lambda i: (0, 0))      # resident accumulator

    def full(shape):                 # resident weight block (constant block index)
        return pl.BlockSpec(shape, lambda i: (0, 0))

    stat_shape = jax.ShapeDtypeStruct((1, HID_PAD), jnp.float32)
    reduce_params = pltpu.CompilerParams(
        dimension_semantics=("arbitrary",), vmem_limit_bytes=VMEM_LIMIT_BYTES)

    # ---- pass 1: BN1 batch statistics over fc1(x) -----------------------------
    ref1, sd1, sdd1 = pl.pallas_call(
        bn1_stats_kernel,
        grid=(nt,),
        in_specs=[x_spec, full((EMBED_DIM, HID_PAD))],
        out_specs=[stat_spec] * 3,
        out_shape=[stat_shape] * 3,
        compiler_params=reduce_params,
        cost_estimate=pl.CostEstimate(
            flops=2 * B * EMBED_DIM * HID_PAD,
            transcendentals=0,
            bytes_accessed=B * EMBED_DIM * itemsize
                           + EMBED_DIM * HID_PAD * itemsize + 3 * HID_PAD * 4),
    )(x, kp["w1"])
    s1, t1 = _scale_shift(ref1, sd1, sdd1, kp["g1"], kp["be1"], B)

    # ---- pass 2: BN2 batch statistics over fc2(relu(bn1(fc1(x)))) -------------
    ref2, sd2, sdd2 = pl.pallas_call(
        bn2_stats_kernel,
        grid=(nt,),
        in_specs=[x_spec, full((EMBED_DIM, HID_PAD)), stat_spec, stat_spec,
                  full((HID_PAD, HID_PAD))],
        out_specs=[stat_spec] * 3,
        out_shape=[stat_shape] * 3,
        compiler_params=reduce_params,
        cost_estimate=pl.CostEstimate(
            flops=2 * B * (EMBED_DIM * HID_PAD + HID_PAD * HID_PAD),
            transcendentals=0,
            bytes_accessed=B * EMBED_DIM * itemsize + w_bytes + 9 * HID_PAD * 4),
    )(x, kp["w1"], s1, t1, kp["w2"])
    s2, t2 = _scale_shift(ref2, sd2, sdd2, kp["g2"], kp["be2"], B)

    # ---- pass 3: fused apply (row-parallel -> shards across v7x's 2 TCs) ------
    out = pl.pallas_call(
        apply_kernel,
        grid=(nt,),
        in_specs=[x_spec, full((EMBED_DIM, HID_PAD)), stat_spec, stat_spec,
                  full((HID_PAD, HID_PAD)), stat_spec, stat_spec,
                  full((HID_PAD, OUT_DIM)), full((1, OUT_DIM))],
        out_specs=pl.BlockSpec((tile_b, OUT_DIM), lambda i: (i, 0)),
        out_shape=jax.ShapeDtypeStruct((B, OUT_DIM), out_dtype),
        compiler_params=pltpu.CompilerParams(
            dimension_semantics=("parallel",), vmem_limit_bytes=VMEM_LIMIT_BYTES),
        cost_estimate=pl.CostEstimate(
            flops=2 * B * (EMBED_DIM * HID_PAD + HID_PAD * HID_PAD + HID_PAD * OUT_DIM),
            transcendentals=2 * B * OUT_DIM,
            bytes_accessed=B * EMBED_DIM * itemsize + w_bytes
                           + B * OUT_DIM * jnp.dtype(out_dtype).itemsize),
    )(x, kp["w1"], s1, t1, kp["w2"], s2, t2, kp["w3"], kp["b3"])
    return out


def init_params(key, embed_dim=EMBED_DIM, hidden_dim=HIDDEN_DIM, out_dim=OUT_DIM):
    """torch-default initialization (used by both the reference and the kernel)."""
    ks = jax.random.split(key, 6)

    def linear_init(kw, kb, fan_in, fan_out):
        bound = 1.0 / jnp.sqrt(fan_in)
        w = jax.random.uniform(kw, (fan_in, fan_out), jnp.float32, -bound, bound)
        b = jax.random.uniform(kb, (1, fan_out), jnp.float32, -bound, bound)
        return w, b

    w1, b1 = linear_init(ks[0], ks[1], embed_dim, hidden_dim)
    w2, b2 = linear_init(ks[2], ks[3], hidden_dim, hidden_dim)
    w3, b3 = linear_init(ks[4], ks[5], hidden_dim, out_dim)
    return {
        "w1": w1, "b1": b1,
        "g1": jnp.ones((1, hidden_dim), jnp.float32),
        "be1": jnp.zeros((1, hidden_dim), jnp.float32),
        "w2": w2, "b2": b2,
        "g2": jnp.ones((1, hidden_dim), jnp.float32),
        "be2": jnp.zeros((1, hidden_dim), jnp.float32),
        "w3": w3, "b3": b3,
    }


def prepare_params(params, matmul_dtype=jnp.float32):
    """One-time kernel-side parameter prep:
      * drop b1/b2 (cancelled exactly by training-mode BN's mean subtraction),
      * zero-pad the hidden dim 72 -> 128 lanes (padded columns stay exactly 0
        through BN+ReLU, so numerics are unchanged),
      * optionally cast matmul operands to bf16 (MXU-native on v5e/v6e/v7x; all
        BN/ReLU/softplus math stays f32) at looser-than-1e-4 tolerance.
    """
    ph = HID_PAD - HIDDEN_DIM
    return {
        "w1": jnp.pad(params["w1"], ((0, 0), (0, ph))).astype(matmul_dtype),
        "g1": jnp.pad(params["g1"], ((0, 0), (0, ph)), constant_values=1.0),
        "be1": jnp.pad(params["be1"], ((0, 0), (0, ph))),
        "w2": jnp.pad(params["w2"], ((0, ph), (0, ph))).astype(matmul_dtype),
        "g2": jnp.pad(params["g2"], ((0, 0), (0, ph)), constant_values=1.0),
        "be2": jnp.pad(params["be2"], ((0, 0), (0, ph))),
        "w3": jnp.pad(params["w3"], ((0, ph), (0, 0))).astype(matmul_dtype),
        "b3": params["b3"],
    }


def reference(x, p):
    """Pure-JAX reference with full torch forward semantics (incl. fc1/fc2 bias,
    two-pass BN statistics, clamped softplus)."""
    def bn(h, gamma, beta):
        mean = jnp.mean(h, axis=0, keepdims=True)
        c = h - mean
        var = jnp.mean(c * c, axis=0, keepdims=True)
        return c * jax.lax.rsqrt(var + BN_EPS) * gamma + beta

    h = x @ p["w1"] + p["b1"]
    h = jnp.maximum(bn(h, p["g1"], p["be1"]), 0.0)
    h = h @ p["w2"] + p["b2"]
    h = jnp.maximum(bn(h, p["g2"], p["be2"]), 0.0)
    out = h @ p["w3"] + p["b3"]
    return jnp.where(out > 20.0, out, jnp.log1p(jnp.exp(jnp.minimum(out, 20.0))))


if __name__ == "__main__":
    key = jax.random.PRNGKey(0)
    kx, kp_key = jax.random.split(key)

    # 512 rows / 256-row tiles -> 2 grid steps per pass (exercises the accumulator
    # + pipelined grid) while staying tiny; 256-row tiles fill the MXU height.
    B, TILE_B = 512, 256
    x = jax.random.normal(kx, (B, EMBED_DIM), jnp.float32)

    params = init_params(kp_key)
    # f32 matmuls: exact torch-float semantics (bf16 available on all chips via
    # prepare_params(params, jnp.bfloat16) at looser tolerance).
    kparams = prepare_params(params, matmul_dtype=jnp.float32)

    out = prediction_module(x, kparams, tile_b=TILE_B)
    out = jax.block_until_ready(out)

    ref = reference(x, params)
    assert out.shape == (B, OUT_DIM)
    assert jnp.allclose(out, ref, atol=1e-4, rtol=1e-4), float(jnp.max(jnp.abs(out - ref)))

    print("KERNEL_OK")
</pallas_src>

<mosaic_0001>
module attributes {stable_mosaic.version = 11 : i64} {
  func.func @bn1_stats_kernel(%arg0: i32, %arg1: memref<256x32xf32, #tpu.memory_space<vmem>>, %arg2: memref<32x128xf32, #tpu.memory_space<vmem>>, %arg3: memref<1x128xf32, #tpu.memory_space<vmem>>, %arg4: memref<1x128xf32, #tpu.memory_space<vmem>>, %arg5: memref<1x128xf32, #tpu.memory_space<vmem>>) attributes {dimension_semantics = [#tpu.dimension_semantics<arbitrary>], iteration_bounds = array<i64: 2>, scalar_prefetch = 0 : i64, scratch_operands = 0 : i64, tpu.core_type = #tpu.core_type<tc>, window_params = [{transform_indices = @transform_0, window_bounds = array<i64: 256, 32>}, {pipeline_mode = #tpu.pipeline_mode<synchronous>, transform_indices = @transform_1, window_bounds = array<i64: 32, 128>}, {pipeline_mode = #tpu.pipeline_mode<synchronous>, transform_indices = @transform_2, window_bounds = array<i64: 1, 128>}, {pipeline_mode = #tpu.pipeline_mode<synchronous>, transform_indices = @transform_3, window_bounds = array<i64: 1, 128>}, {pipeline_mode = #tpu.pipeline_mode<synchronous>, transform_indices = @transform_4, window_bounds = array<i64: 1, 128>}]} {
    %c0 = arith.constant 0 : index
    %c0_0 = arith.constant 0 : index
    %0 = vector.load %arg1[%c0, %c0_0] : memref<256x32xf32, #tpu.memory_space<vmem>>, vector<256x32xf32>
    %c0_1 = arith.constant 0 : index
    %c0_2 = arith.constant 0 : index
    %1 = vector.load %arg2[%c0_1, %c0_2] : memref<32x128xf32, #tpu.memory_space<vmem>>, vector<32x128xf32>
    %cst = arith.constant dense<0.000000e+00> : vector<256x128xf32>
    %2 = tpu.matmul %0, %1, %cst {dimension_numbers = #tpu.dot_dimension_numbers<[1], [0], [0], [1], [0, 0, 1, 1], [], []>} : vector<256x32xf32>, vector<32x128xf32>, vector<256x128xf32> -> vector<256x128xf32>
    %c0_i32 = arith.constant 0 : i32
    %3 = arith.cmpi eq, %arg0, %c0_i32 : i32
    %4 = arith.extui %3 : i1 to i32
    %c0_i32_3 = arith.constant 0 : i32
    %5 = arith.cmpi ne, %4, %c0_i32_3 : i32
    scf.if %5 {
      %cst_16 = arith.constant dense<0.000000e+00> : vector<128xf32>
      %20 = vector.multi_reduction <add>, %2, %cst_16 [0] : vector<256x128xf32> to vector<128xf32>
      %21 = vector.shape_cast %20 : vector<128xf32> to vector<1x128xf32>
      %cst_17 = arith.constant 2.560000e+02 : f32
      %22 = vector.broadcast %cst_17 : f32 to vector<1x128xf32>
      %23 = arith.divf %21, %22 : vector<1x128xf32>
      %c0_18 = arith.constant 0 : index
      %c0_19 = arith.constant 0 : index
      %24 = vector.load %arg3[%c0_18, %c0_19] : memref<1x128xf32, #tpu.memory_space<vmem>>, vector<1x128xf32>
      tpu.vector_store %arg3[%c0_18, %c0_19], %23 {strides = array<i32>} : memref<1x128xf32, #tpu.memory_space<vmem>>, vector<1x128xf32>,
      %cst_20 = arith.constant 0.000000e+00 : f32
      %25 = vector.broadcast %cst_20 : f32 to vector<1x128xf32>
      %c0_21 = arith.constant 0 : index
      %c0_22 = arith.constant 0 : index
      %26 = vector.load %arg4[%c0_21, %c0_22] : memref<1x128xf32, #tpu.memory_space<vmem>>, vector<1x128xf32>
      tpu.vector_store %arg4[%c0_21, %c0_22], %25 {strides = array<i32>} : memref<1x128xf32, #tpu.memory_space<vmem>>, vector<1x128xf32>,
      %cst_23 = arith.constant 0.000000e+00 : f32
      %27 = vector.broadcast %cst_23 : f32 to vector<1x128xf32>
      %c0_24 = arith.constant 0 : index
      %c0_25 = arith.constant 0 : index
      %28 = vector.load %arg5[%c0_24, %c0_25] : memref<1x128xf32, #tpu.memory_space<vmem>>, vector<1x128xf32>
      tpu.vector_store %arg5[%c0_24, %c0_25], %27 {strides = array<i32>} : memref<1x128xf32, #tpu.memory_space<vmem>>, vector<1x128xf32>,
    } else {
    }
    %c0_4 = arith.constant 0 : index
    %c0_5 = arith.constant 0 : index
    %6 = vector.load %arg3[%c0_4, %c0_5] : memref<1x128xf32, #tpu.memory_space<vmem>>, vector<1x128xf32>
    %7 = vector.broadcast %6 : vector<1x128xf32> to vector<256x128xf32>
    %8 = arith.subf %2, %7 : vector<256x128xf32>
    %c0_6 = arith.constant 0 : index
    %c0_7 = arith.constant 0 : index
    %9 = vector.load %arg4[%c0_6, %c0_7] : memref<1x128xf32, #tpu.memory_space<vmem>>, vector<1x128xf32>
    %cst_8 = arith.constant dense<0.000000e+00> : vector<128xf32>
    %10 = vector.multi_reduction <add>, %8, %cst_8 [0] : vector<256x128xf32> to vector<128xf32>
    %11 = vector.shape_cast %10 : vector<128xf32> to vector<1x128xf32>
    %12 = arith.addf %9, %11 : vector<1x128xf32>
    %c0_9 = arith.constant 0 : index
    %c0_10 = arith.constant 0 : index
    %13 = vector.load %arg4[%c0_9, %c0_10] : memref<1x128xf32, #tpu.memory_space<vmem>>, vector<1x128xf32>
    tpu.vector_store %arg4[%c0_9, %c0_10], %12 {strides = array<i32>} : memref<1x128xf32, #tpu.memory_space<vmem>>, vector<1x128xf32>,
    %c0_11 = arith.constant 0 : index
    %c0_12 = arith.constant 0 : index
    %14 = vector.load %arg5[%c0_11, %c0_12] : memref<1x128xf32, #tpu.memory_space<vmem>>, vector<1x128xf32>
    %15 = arith.mulf %8, %8 : vector<256x128xf32>
    %cst_13 = arith.constant dense<0.000000e+00> : vector<128xf32>
    %16 = vector.multi_reduction <add>, %15, %cst_13 [0] : vector<256x128xf32> to vector<128xf32>
    %17 = vector.shape_cast %16 : vector<128xf32> to vector<1x128xf32>
    %18 = arith.addf %14, %17 : vector<1x128xf32>
    %c0_14 = arith.constant 0 : index
    %c0_15 = arith.constant 0 : index
    %19 = vector.load %arg5[%c0_14, %c0_15] : memref<1x128xf32, #tpu.memory_space<vmem>>, vector<1x128xf32>
    tpu.vector_store %arg5[%c0_14, %c0_15], %18 {strides = array<i32>} : memref<1x128xf32, #tpu.memory_space<vmem>>, vector<1x128xf32>,
    return
  }
  func.func @transform_0(%arg0: i32) -> (i32, i32) {
    %c0_i32 = arith.constant 0 : i32
    %c0_i32_0 = arith.constant 0 : i32
    return %arg0, %c0_i32 : i32, i32
  }
  func.func @transform_1(%arg0: i32) -> (i32, i32) {
    %c0_i32 = arith.constant 0 : i32
    %c0_i32_0 = arith.constant 0 : i32
    %c0_i32_1 = arith.constant 0 : i32
    return %c0_i32, %c0_i32_0 : i32, i32
  }
  func.func @transform_2(%arg0: i32) -> (i32, i32) {
    %c0_i32 = arith.constant 0 : i32
    %c0_i32_0 = arith.constant 0 : i32
    %c0_i32_1 = arith.constant 0 : i32
    return %c0_i32, %c0_i32_0 : i32, i32
  }
  func.func @transform_3(%arg0: i32) -> (i32, i32) {
    %c0_i32 = arith.constant 0 : i32
    %c0_i32_0 = arith.constant 0 : i32
    %c0_i32_1 = arith.constant 0 : i32
    return %c0_i32, %c0_i32_0 : i32, i32
  }
  func.func @transform_4(%arg0: i32) -> (i32, i32) {
    %c0_i32 = arith.constant 0 : i32
    %c0_i32_0 = arith.constant 0 : i32
    %c0_i32_1 = arith.constant 0 : i32
    return %c0_i32, %c0_i32_0 : i32, i32
  }
}

</mosaic_0001>

<bundles_post_ra>
// kernel: tpu_custom_call.1
= control target key start
LH: loop header
LB: loop body
LE: loop exit
PB: predicated region body
PF: predicated region fallthrough
CT: control target
= control target key end

     0   :  { %10 = vsyncpa [#allocation3], 0  ;;  %s1452_s0 = inlined_call_operand.vmem [shape: f32[512,32], index: 0, kind: input, shape index: {}]   ;;  %s1453_s1 = inlined_call_operand.vmem [shape: f32[32,128], index: 1, kind: input, shape index: {}]   ;;  %s1454_s2 = inlined_call_operand.hbm [shape: f32[1,128], index: 2, kind: output, shape index: {0}]   ;;  %s1455_s3 = inlined_call_operand.hbm [shape: f32[1,128], index: 3, kind: output, shape index: {1}]   ;;  %s1456_s4 = inlined_call_operand.hbm [shape: f32[1,128], index: 4, kind: output, shape index: {2}]  }
   0x1   :  { %11 = vsyncpa [#allocation5], 0  ;;  %s1131_s15 = smov 0  }
   0x2 LB: > { %s1137_s16 = sadd.s32 4294967295, %s1100_s15   ;;  %p829_p0 = scmp.ge.s32.totalorder %s1100_s15, 1  ;;  %s1100_s15 = sphi %s1131_s15, %s17_s15  }
   0x3   : > { %p155_p1 = scmp.lt.s32.totalorder %s1100_s15, 3 }
   0x5   : > { %p156_p2 = pnand %p829_p0, %p155_p1 }
   0x6   : > { %v214_v0 = vld [vmem:[%s1453_s1] sm:$0xff] (!%p156_p2)  ;;  %v215_v1 = vld [vmem:[%s1453_s1 + $0x8] sm:$0xff] (!%p156_p2)  ;;  %v216_v2 = vld [vmem:[%s1453_s1 + $0x10] sm:$0xff] (!%p156_p2)  ;;  %s830_s23 = sshll.u32 (!%p156_p2), %s1137_s16, 5  ;;  %vm218_vm0 = vcmask (!%p156_p2), 261120   ;;  %p864_p4 = scmp.ne.s32.totalorder (!%p156_p2), %s1137_s16, 0 }
   0x7   : > { %159 = sbr.rel (%p156_p2) target bundleno = 449 (0x1c1), region = 28  ;;  %v966_v3 = vpack.c.bf16 (!%p156_p2), %v215_v1, %v214_v0  ;;  %v217_v4 = vld [vmem:[%s1453_s1 + $0x18] sm:$0xff] (!%p156_p2)  ;;  %p177_p3 = scmp.lt.s32.totalorder (!%p156_p2), %s830_s23, 63 }
   0x8   : > { %v970_v5 = vpack.c.bf16 (!%p156_p2), %v217_v4, %v216_v2 }
   0x9   : > { %967 = vmatprep.subr.bf16.mxu0 (!%p156_p2), %v966_v3  ;;  %974 = vmatprep.subr.bf16.mxu1 (!%p156_p2), %v966_v3 }
   0xa   : > { %969 = vmatpush3.bf16.msra.mxu0 (!%p156_p2), %v966_v3  ;;  %976 = vmatpush3.bf16.msra.mxu1 (!%p156_p2), %v966_v3 }
   0xb   : > { %971 = vmatprep.subr.bf16.mxu0 (!%p156_p2), %v970_v5  ;;  %975 = vmatprep.subr.bf16.mxu1 (!%p156_p2), %v970_v5 }
   0xe   : > { %s1458_s23 = smov (!%p177_p3, %s830_s23), 63  ;;  %973 = vmatpush3.bf16.msra.mxu0 %v970_v5  ;;  %977 = vmatpush3.bf16.msra.mxu1 %v970_v5 }
   0xf   : > { %s831_s26 = sshll.u32 %s1458_s23, 3 }
  0x10   : > { %s1157_s29 = scalar_lea.vmem %s1452_s0, %s831_s26 }
  0x11   : > { %v182_v6 = vld [vmem:[%s1157_s29] sm:$0xff]  ;;  %v183_v8 = vld [vmem:[%s1157_s29 + $0x8] sm:$0xff]  ;;  %v184_v10 = vld [vmem:[%s1157_s29 + $0x10] sm:$0xff] }
  0x12   : > { %v198_v7 = vld [vmem:[%s1157_s29 + $0x80] sm:$0xff]  ;;  %v199_v9 = vld [vmem:[%s1157_s29 + $0x88] sm:$0xff]  ;;  %918 = vmatprep.mubr.msk.f32.mxu0 %vm218_vm0, %v182_v6  ;;  %v200_v11 = vld [vmem:[%s1157_s29 + $0x90] sm:$0xff] }
  0x13   : > { %942 = vmatprep.mubr.msk.f32.mxu1 %vm218_vm0, %v198_v7  ;;  %919 = vmatmul.mubr.msk.f32.vlgmr.msra.gmra.mrb[0].mxu0 %vm218_vm0, %v183_v8  ;;  %v185_v12 = vld [vmem:[%s1157_s29 + $0x18] sm:$0xff]  ;;  %v186_v14 = vld [vmem:[%s1157_s29 + $0x20] sm:$0xff]  ;;  %v187_v16 = vld [vmem:[%s1157_s29 + $0x28] sm:$0xff]  ;;  %v1102_v7 = vmov (!%p864_p4), 0.0  }
  0x14   : > { %943 = vmatmul.mubr.msk.f32.vlgmr.msra.gmra.mrb[0].mxu1 %vm218_vm0, %v199_v9  ;;  %921 = vmatprep.mubr.msk.f32.mxu0 %vm218_vm0, %v184_v10  ;;  %v201_v13 = vld [vmem:[%s1157_s29 + $0x98] sm:$0xff]  ;;  %v202_v15 = vld [vmem:[%s1157_s29 + $0xa0] sm:$0xff]  ;;  %v203_v17 = vld [vmem:[%s1157_s29 + $0xa8] sm:$0xff]  ;;  %584 = vst [vmem:[#allocation4] sm:$0x1] (!%p864_p4), %v1102_v7 }
  0x15   : > { %945 = vmatprep.mubr.msk.f32.mxu1 %vm218_vm0, %v200_v11  ;;  %v188_v18 = vld [vmem:[%s1157_s29 + $0x30] sm:$0xff]  ;;  %v189_v20 = vld [vmem:[%s1157_s29 + $0x38] sm:$0xff]  ;;  %v190_v22 = vld [vmem:[%s1157_s29 + $0x40] sm:$0xff]  ;;  %585 = vst [vmem:[#allocation6] sm:$0x1] (!%p864_p4), %v1102_v7 }
  0x16   : > { %v204_v19 = vld [vmem:[%s1157_s29 + $0xb0] sm:$0xff]  ;;  %v205_v21 = vld [vmem:[%s1157_s29 + $0xb8] sm:$0xff]  ;;  %v206_v23 = vld [vmem:[%s1157_s29 + $0xc0] sm:$0xff] }
  0x17   : > { %922 = vmatmul.mubr.msk.f32.gmra.mrb[2].mxu0 %vm218_vm0, %v185_v12  ;;  %v191_v24 = vld [vmem:[%s1157_s29 + $0x48] sm:$0xff]  ;;  %v192_v26 = vld [vmem:[%s1157_s29 + $0x50] sm:$0xff]  ;;  %v193_v28 = vld [vmem:[%s1157_s29 + $0x58] sm:$0xff] }
  0x18   : > { %946 = vmatmul.mubr.msk.f32.gmra.mrb[2].mxu1 %vm218_vm0, %v201_v13  ;;  %924 = vmatprep.mubr.msk.f32.mxu0 %vm218_vm0, %v186_v14  ;;  %v207_v25 = vld [vmem:[%s1157_s29 + $0xc8] sm:$0xff]  ;;  %v208_v27 = vld [vmem:[%s1157_s29 + $0xd0] sm:$0xff]  ;;  %v209_v29 = vld [vmem:[%s1157_s29 + $0xd8] sm:$0xff] }
  0x19   : > { %948 = vmatprep.mubr.msk.f32.mxu1 %vm218_vm0, %v202_v15  ;;  %v194_v30 = vld [vmem:[%s1157_s29 + $0x60] sm:$0xff]  ;;  %v195_v32 = vld [vmem:[%s1157_s29 + $0x68] sm:$0xff]  ;;  %v196_v34 = vld [vmem:[%s1157_s29 + $0x70] sm:$0xff] }
  0x1a   : > { %v210_v31 = vld [vmem:[%s1157_s29 + $0xe0] sm:$0xff]  ;;  %v211_v33 = vld [vmem:[%s1157_s29 + $0xe8] sm:$0xff]  ;;  %v212_v35 = vld [vmem:[%s1157_s29 + $0xf0] sm:$0xff] }
  0x1b   : > { %925 = vmatmul.mubr.msk.f32.gmra.mrb[4].mxu0 %vm218_vm0, %v187_v16  ;;  %v197_v36 = vld [vmem:[%s1157_s29 + $0x78] sm:$0xff] }
  0x1c   : > { %949 = vmatmul.mubr.msk.f32.gmra.mrb[4].mxu1 %vm218_vm0, %v203_v17  ;;  %927 = vmatprep.mubr.msk.f32.mxu0 %vm218_vm0, %v188_v18  ;;  %v213_v37 = vld [vmem:[%s1157_s29 + $0xf8] sm:$0xff] }
  0x1d   : > { %951 = vmatprep.mubr.msk.f32.mxu1 %vm218_vm0, %v204_v19 }
  0x1f   : > { %928 = vmatmul.mubr.msk.f32.gmra.mrb[6].mxu0 %vm218_vm0, %v189_v20 }
  0x20   : > { %952 = vmatmul.mubr.msk.f32.gmra.mrb[6].mxu1 %vm218_vm0, %v205_v21  ;;  %930 = vmatprep.mubr.msk.f32.mxu0 %vm218_vm0, %v190_v22 }
  0x21   : > { %954 = vmatprep.mubr.msk.f32.mxu1 %vm218_vm0, %v206_v23 }
  0x23   : > { %931 = vmatmul.mubr.msk.f32.gmra.mrb[8].mxu0 %vm218_vm0, %v191_v24 }
  0x24   : > { %955 = vmatmul.mubr.msk.f32.gmra.mrb[8].mxu1 %vm218_vm0, %v207_v25  ;;  %933 = vmatprep.mubr.msk.f32.mxu0 %vm218_vm0, %v192_v26 }
  0x25   : > { %957 = vmatprep.mubr.msk.f32.mxu1 %vm218_vm0, %v208_v27 }
  0x27   : > { %934 = vmatmul.mubr.msk.f32.gmra.mrb[10].mxu0 %vm218_vm0, %v193_v28 }
  0x28   : > { %958 = vmatmul.mubr.msk.f32.gmra.mrb[10].mxu1 %vm218_vm0, %v209_v29  ;;  %936 = vmatprep.mubr.msk.f32.mxu0 %vm218_vm0, %v194_v30 }
  0x29   : > { %960 = vmatprep.mubr.msk.f32.mxu1 %vm218_vm0, %v210_v31 }
  0x2b   : > { %937 = vmatmul.mubr.msk.f32.gmra.mrb[12].mxu0 %vm218_vm0, %v195_v32 }
  0x2c   : > { %961 = vmatmul.mubr.msk.f32.gmra.mrb[12].mxu1 %vm218_vm0, %v211_v33  ;;  %939 = vmatprep.mubr.msk.f32.mxu0 %vm218_vm0, %v196_v34 }
  0x2d   : > { %963 = vmatprep.mubr.msk.f32.mxu1 %vm218_vm0, %v212_v35 }
  0x2f   : > { %940 = vmatmul.mubr.msk.f32.gmra.mrb[14].mxu0 %vm218_vm0, %v197_v36 }
  0x30   : > { %964 = vmatmul.mubr.msk.f32.gmra.mrb[14].mxu1 %vm218_vm0, %v213_v37 }
  0xe6   : > { %v1223_v38 = vpop.f32.mrb[0].mxu0 }
  0xe7   : > { %v1225_v39 = vpop.f32.mrb[0].mxu1  ;;  %v1227_v40 = vpop.f32.mrb[1].mxu0 }
  0xe8   : > { %v1229_v41 = vpop.f32.mrb[1].mxu1  ;;  %v544_v6 = vadd.f32 (!%p864_p4), %v1223_v38, %v1227_v40 }
  0xea   : > { %v1231_v42 = vpop.f32.mrb[2].mxu0 }
  0xeb   : > { %v1233_v43 = vpop.f32.mrb[2].mxu1  ;;  %v1235_v44 = vpop.f32.mrb[3].mxu0 }
  0xec   : > { %v1237_v45 = vpop.f32.mrb[3].mxu1  ;;  %v545_v8 = vadd.f32 (!%p864_p4), %v544_v6, %v1235_v44 }
  0xee   : > { %v1239_v46 = vpop.f32.mrb[4].mxu0  ;;  %v546_v9 = vadd.f32 (!%p864_p4), %v1231_v42, %v545_v8 }
  0xef   : > { %v1241_v47 = vpop.f32.mrb[4].mxu1  ;;  %v1243_v48 = vpop.f32.mrb[5].mxu0 }
  0xf0   : > { %v1245_v49 = vpop.f32.mrb[5].mxu1  ;;  %v547_v10 = vadd.f32 (!%p864_p4), %v546_v9, %v1243_v48 }
  0xf2   : > { %v1247_v50 = vpop.f32.mrb[6].mxu0  ;;  %v548_v11 = vadd.f32 (!%p864_p4), %v1239_v46, %v547_v10 }
  0xf3   : > { %v1249_v51 = vpop.f32.mrb[6].mxu1  ;;  %v1251_v52 = vpop.f32.mrb[7].mxu0 }
  0xf4   : > { %v1253_v53 = vpop.f32.mrb[7].mxu1  ;;  %v549_v12 = vadd.f32 (!%p864_p4), %v548_v11, %v1251_v52 }
  0xf6   : > { %v1255_v54 = vpop.f32.mrb[8].mxu0  ;;  %v550_v13 = vadd.f32 (!%p864_p4), %v1247_v50, %v549_v12 }
  0xf7   : > { %v1257_v55 = vpop.f32.mrb[8].mxu1  ;;  %v1259_v56 = vpop.f32.mrb[9].mxu0 }
  0xf8   : > { %v1261_v57 = vpop.f32.mrb[9].mxu1  ;;  %v551_v14 = vadd.f32 (!%p864_p4), %v550_v13, %v1259_v56 }
  0xfa   : > { %v1263_v58 = vpop.f32.mrb[10].mxu0  ;;  %v552_v15 = vadd.f32 (!%p864_p4), %v1255_v54, %v551_v14 }
  0xfb   : > { %v1265_v59 = vpop.f32.mrb[10].mxu1  ;;  %v1267_v60 = vpop.f32.mrb[11].mxu0 }
  0xfc   : > { %v1269_v61 = vpop.f32.mrb[11].mxu1  ;;  %v553_v16 = vadd.f32 (!%p864_p4), %v552_v15, %v1267_v60 }
  0xfe   : > { %v1271_v62 = vpop.f32.mrb[12].mxu0  ;;  %543 = sbr.rel (%p864_p4) target bundleno = 311 (0x137), region = 32  ;;  %v554_v17 = vadd.f32 (!%p864_p4), %v1263_v58, %v553_v16 }
  0xff   : > { %v1273_v63 = vpop.f32.mrb[12].mxu1  ;;  %v1275_v0 = vpop.f32.mrb[13].mxu0 }
 0x100   : > { %v1277_v1 = vpop.f32.mrb[13].mxu1  ;;  %v555_v18 = vadd.f32 (!%p864_p4), %v554_v17, %v1275_v0 }
 0x102   : > { %v1279_v2 = vpop.f32.mrb[14].mxu0  ;;  %v556_v19 = vadd.f32 (!%p864_p4), %v1271_v62, %v555_v18 }
 0x103   : > { %v1281_v3 = vpop.f32.mrb[14].mxu1  ;;  %v1283_v4 = vpop.f32.mrb[15].mxu0 }
 0x104   : > { %v1285_v5 = vpop.f32.mrb[15].mxu1  ;;  %v557_v20 = vadd.f32 (!%p864_p4), %v556_v19, %v1283_v4 }
 0x106   : > { %v558_v21 = vadd.f32 %v1279_v2, %v557_v20 }
 0x108   : > { %v559_v22 = vadd.f32 %v558_v21, %v1229_v41 }
 0x10a   : > { %v560_v23 = vadd.f32 %v1225_v39, %v559_v22 }
 0x10c   : > { %v561_v24 = vadd.f32 %v560_v23, %v1237_v45 }
 0x10e   : > { %v562_v25 = vadd.f32 %v1233_v43, %v561_v24 }
 0x110   : > { %v563_v26 = vadd.f32 %v562_v25, %v1245_v49 }
 0x112   : > { %v564_v27 = vadd.f32 %v1241_v47, %v563_v26 }
 0x114   : > { %v565_v28 = vadd.f32 %v564_v27, %v1253_v53 }
 0x116   : > { %v566_v29 = vadd.f32 %v1249_v51, %v565_v28 }
 0x118   : > { %v567_v30 = vadd.f32 %v566_v29, %v1261_v57 }
 0x11a   : > { %v568_v31 = vadd.f32 %v1257_v55, %v567_v30 }
 0x11c   : > { %v569_v32 = vadd.f32 %v568_v31, %v1269_v61 }
 0x11e   : > { %v570_v33 = vadd.f32 %v1265_v59, %v569_v32 }
 0x120   : > { %v571_v34 = vadd.f32 %v570_v33, %v1277_v1 }
 0x122   : > { %v572_v35 = vadd.f32 %v1273_v63, %v571_v34 }
 0x124   : > { %v573_v36 = vadd.f32 %v572_v35, %v1285_v5 }
 0x126   : > { %v574_v37 = vadd.f32 %v1281_v3, %v573_v36 }
 0x128   : > { %v575_v6 = vrot.slane %v574_v37, 4 }
 0x12a   : > { %v576_v7 = vadd.f32 %v575_v6, %v574_v37 }
 0x12c   : > { %v577_v8 = vrot.slane %v576_v7, 2 }
 0x12e   : > { %v578_v9 = vadd.f32 %v577_v8, %v576_v7 }
 0x130   : > { %v579_v10 = vrot.slane %v578_v9, 1 }
 0x132   : > { %v580_v11 = vadd.f32 %v579_v10, %v578_v9 }
 0x134   : > { %v582_v12 = vmul.f32 0.00390625, %v580_v11 }
 0x136   : > { %583 = vst [vmem:[#allocation2] sm:$0x1] %v582_v12 }
 0x137 PF: > { %p990_p5 = scmp.eq.s32.totalorder %s1137_s16, 1  ;;  %s1103_s30 = smov [#allocation2]  }
 0x138   : > { %s744_s5 = sshll.u32 %s1103_s30, 4  ;;  %s745_s5 = int_to_ptr.vmem [resolvable:$true] %s744_s5 }
 0x139   : > { %s1008_s6 = scalar_lea.vmem %s745_s5, 16  ;;  %s1014_s7 = scalar_lea.vmem %s745_s5, 32 }
 0x13a   : > { %p1009_p6 = scmp.ne.s32.totalorder %s745_s5, %s1008_s6  ;;  %p1015_p9 = scmp.lt.s32.totalorder %s745_s5, %s745_s5 }
 0x13b   : > { %p1016_p10 = scmp.lt.s32.totalorder %s1014_s7, %s1008_s6 }
 0x13c   : > { %p1010_p7 = pnand %p1009_p6, %p990_p5 }
 0x13d   : > { %v1320_v13 = vld [vmem:[#allocation2] ss:$0 sm:$0xff]  ;;  %p1017_p11 = por %p1016_p10, %p1015_p9 }
 0x13e   : > { %v593_v14 = vsub.f32 %v1227_v40, %v1320_v13  ;;  %v594_v15 = vsub.f32 %v1223_v38, %v1320_v13  ;;  %p1011_p8 = pneg %p1010_p7 }
 0x140   : > { %p1018_p12 = pnand %p1017_p11, %p1011_p8 }
 0x142   : > { %1021 = shalt.err (!%p1018_p12)
}
 0x143   : > { %s1022_s10 = scalar_lea.hbm %s1454_s2, 16 }
 0x144   : > { %p1023_p13 = scmp.ne.s32.totalorder %s1454_s2, %s1022_s10  ;;  %p1028_p2 = scmp.lt.u32.totalorder %s1022_s10, %s1454_s2 }
 0x146   : > { %p1024_p0 = pnand %p1023_p13, %p990_p5 }
 0x148   : > { %p1025_p1 = pneg %p1024_p0 }
 0x14a   : > { %p1030_p3 = pnand %p1028_p2, %p1025_p1 }
 0x14c   : > { %1033 = shalt.err (!%p1030_p3)
}
 0x14d   : > { %979 = dma.vmem_to_hbm [thread:$0]  (%p990_p5), %s745_s5, 16, %s1454_s2, [#allocation3]   ;;  %v595_v38 = vsub.f32 %v1235_v44, %v1320_v13  ;;  %v596_v40 = vsub.f32 %v1231_v42, %v1320_v13  ;;  %v626_v16 = vadd.f32 %v594_v15, %v593_v14  ;;  %v597_v17 = vsub.f32 %v1243_v48, %v1320_v13 }
 0x14e   : > { %v598_v19 = vsub.f32 %v1239_v46, %v1320_v13  ;;  %v666_v21 = vmul.f32 %v593_v14, %v593_v14  ;;  %v667_v22 = vmul.f32 %v594_v15, %v594_v15  ;;  %v599_v23 = vsub.f32 %v1251_v52, %v1320_v13  ;;  %s1104_s19 = smov [#allocation4]  }
 0x14f   : > { %v627_v18 = vadd.f32 %v626_v16, %v595_v38  ;;  %v668_v25 = vmul.f32 %v595_v38, %v595_v38  ;;  %v600_v44 = vsub.f32 %v1247_v50, %v1320_v13  ;;  %v669_v26 = vmul.f32 %v596_v40, %v596_v40  ;;  %s755_s20 = sshll.u32 %s1104_s19, 4  ;;  %s756_s20 = int_to_ptr.vmem [resolvable:$true] %s755_s20 }
 0x150   : > { %v698_v27 = vadd.f32 %v667_v22, %v666_v21  ;;  %v601_v48 = vsub.f32 %v1259_v56, %v1320_v13  ;;  %v670_v29 = vmul.f32 %v597_v17, %v597_v17  ;;  %v602_v30 = vsub.f32 %v1255_v54, %v1320_v13  ;;  %s1034_s21 = scalar_lea.vmem %s756_s20, 16  ;;  %s1040_s22 = scalar_lea.vmem %s756_s20, 32 }
 0x151   : > { %v628_v20 = vadd.f32 %v627_v18, %v596_v40  ;;  %v671_v32 = vmul.f32 %v598_v19, %v598_v19  ;;  %v603_v33 = vsub.f32 %v1267_v60, %v1320_v13  ;;  %v672_v50 = vmul.f32 %v599_v23, %v599_v23  ;;  %p1035_p4 = scmp.ne.s32.totalorder %s756_s20, %s1034_s21  ;;  %p1041_p8 = scmp.lt.s32.totalorder %s756_s20, %s756_s20 }
 0x152   : > { %v699_v46 = vadd.f32 %v698_v27, %v668_v25  ;;  %v604_v36 = vsub.f32 %v1263_v58, %v1320_v13  ;;  %v673_v56 = vmul.f32 %v600_v44, %v600_v44  ;;  %v605_v7 = vsub.f32 %v1275_v0, %v1320_v13  ;;  %p1042_p9 = scmp.lt.s32.totalorder %s1040_s22, %s1034_s21 }
 0x153   : > { %v629_v24 = vadd.f32 %v628_v20, %v597_v17  ;;  %v674_v54 = vmul.f32 %v601_v48, %v601_v48  ;;  %v606_v10 = vsub.f32 %v1271_v62, %v1320_v13  ;;  %v675_v60 = vmul.f32 %v602_v30, %v602_v30  ;;  %p1036_p6 = pnand %p1035_p4, %p990_p5 }
 0x154   : > { %v700_v52 = vadd.f32 %v699_v46, %v669_v26  ;;  %v607_v14 = vsub.f32 %v1283_v4, %v1320_v13  ;;  %v676_v58 = vmul.f32 %v603_v33, %v603_v33  ;;  %v608_v40 = vsub.f32 %v1279_v2, %v1320_v13  ;;  %p1043_p10 = por %p1042_p9, %p1041_p8 }
 0x155   : > { %v630_v42 = vadd.f32 %v629_v24, %v598_v19  ;;  %v677_v0 = vmul.f32 %v604_v36, %v604_v36  ;;  %v609_v18 = vsub.f32 %v1229_v41, %v1320_v13  ;;  %v678_v62 = vmul.f32 %v605_v7, %v605_v7  ;;  %p1037_p7 = pneg %p1036_p6 }
 0x156   : > { %v701_v35 = vadd.f32 %v700_v52, %v670_v29  ;;  %v610_v21 = vsub.f32 %v1225_v39, %v1320_v13  ;;  %v679_v4 = vmul.f32 %v606_v10, %v606_v10  ;;  %v611_v24 = vsub.f32 %v1237_v45, %v1320_v13 }
 0x157   : > { %v631_v28 = vadd.f32 %v630_v42, %v599_v23  ;;  %v680_v2 = vmul.f32 %v607_v14, %v607_v14  ;;  %v612_v42 = vsub.f32 %v1233_v43, %v1320_v13  ;;  %v681_v41 = vmul.f32 %v608_v40, %v608_v40  ;;  %p1044_p11 = pnand %p1043_p10, %p1037_p7 }
 0x158   : > { %v702_v6 = vadd.f32 %v701_v35, %v671_v32  ;;  %v682_v39 = vmul.f32 %v609_v18, %v609_v18  ;;  %v614_v46 = vsub.f32 %v1241_v47, %v1320_v13  ;;  %v683_v45 = vmul.f32 %v610_v21, %v610_v21 }
 0x159   : > { %v632_v31 = vadd.f32 %v631_v28, %v600_v44  ;;  %v615_v32 = vsub.f32 %v1253_v53, %v1320_v13  ;;  %v684_v43 = vmul.f32 %v611_v24, %v611_v24 }
 0x15a   : > { %v703_v9 = vadd.f32 %v702_v6, %v672_v50  ;;  %v618_v6 = vsub.f32 %v1257_v55, %v1320_v13  ;;  %v687_v53 = vmul.f32 %v614_v46, %v614_v46 }
 0x15b   : > { %v633_v34 = vadd.f32 %v632_v31, %v601_v48  ;;  %v613_v48 = vsub.f32 %v1245_v49, %v1320_v13  ;;  %v685_v49 = vmul.f32 %v612_v42, %v612_v42 }
 0x15c   : > { %v704_v12 = vadd.f32 %v703_v9, %v673_v56 }
 0x15d   : > { %v634_v37 = vadd.f32 %v633_v34, %v602_v30  ;;  %v616_v34 = vsub.f32 %v1249_v51, %v1320_v13  ;;  %v686_v47 = vmul.f32 %v613_v48, %v613_v48  ;;  %v688_v51 = vmul.f32 %v615_v32, %v615_v32 }
 0x15e   : > { %v705_v38 = vadd.f32 %v704_v12, %v674_v54  ;;  %v619_v54 = vsub.f32 %v1269_v61, %v1320_v13  ;;  %v691_v61 = vmul.f32 %v618_v6, %v618_v6 }
 0x15f   : > { %v635_v8 = vadd.f32 %v634_v37, %v603_v33 }
 0x160   : > { %v706_v17 = vadd.f32 %v705_v38, %v675_v60  ;;  %v622_v38 = vsub.f32 %v1273_v63, %v1320_v13 }
 0x161   : > { %v636_v11 = vadd.f32 %v635_v8, %v604_v36  ;;  %v617_v36 = vsub.f32 %v1261_v57, %v1320_v13  ;;  %v689_v57 = vmul.f32 %v616_v34, %v616_v34 }
 0x162   : > { %v707_v20 = vadd.f32 %v706_v17, %v676_v58  ;;  %v695_v63 = vmul.f32 %v622_v38, %v622_v38 }
 0x163   : > { %v637_v15 = vadd.f32 %v636_v11, %v605_v7  ;;  %v620_v11 = vsub.f32 %v1265_v59, %v1320_v13  ;;  %v690_v55 = vmul.f32 %v617_v36, %v617_v36  ;;  %v692_v59 = vmul.f32 %v619_v54, %v619_v54 }
 0x164   : > { %v708_v23 = vadd.f32 %v707_v20, %v677_v0  ;;  %v623_v0 = vsub.f32 %v1285_v5, %v1320_v13 }
 0x165   : > { %v638_v16 = vadd.f32 %v637_v15, %v606_v10 }
 0x166   : > { %v709_v44 = vadd.f32 %v708_v23, %v678_v62 }
 0x167   : > { %v639_v19 = vadd.f32 %v638_v16, %v607_v14  ;;  %v621_v14 = vsub.f32 %v1277_v1, %v1320_v13  ;;  %v693_v1 = vmul.f32 %v620_v11, %v620_v11 }
 0x168   : > { %v710_v27 = vadd.f32 %v709_v44, %v679_v4 }
 0x169   : > { %v640_v22 = vadd.f32 %v639_v19, %v608_v40  ;;  %v624_v19 = vsub.f32 %v1281_v3, %v1320_v13 }
 0x16a   : > { %v711_v29 = vadd.f32 %v710_v27, %v680_v2  ;;  %v696_v2 = vmul.f32 %v623_v0, %v623_v0 }
 0x16b   : > { %v641_v25 = vadd.f32 %v640_v22, %v609_v18  ;;  %v694_v22 = vmul.f32 %v621_v14, %v621_v14  ;;  %v697_v5 = vmul.f32 %v624_v19, %v624_v19 }
 0x16c   : > { %v712_v31 = vadd.f32 %v711_v29, %v681_v41 }
 0x16d   : > { %v642_v26 = vadd.f32 %v641_v25, %v610_v21 }
 0x16e   : > { %v713_v33 = vadd.f32 %v712_v31, %v682_v39 }
 0x16f   : > { %v643_v28 = vadd.f32 %v642_v26, %v611_v24 }
 0x170   : > { %v714_v35 = vadd.f32 %v713_v33, %v683_v45 }
 0x171   : > { %v644_v30 = vadd.f32 %v643_v28, %v612_v42  ;;  %v625_v28 = vld [vmem:[#allocation4] sm:$0x1] }
 0x172   : > { %v715_v56 = vadd.f32 %v714_v35, %v684_v43 }
 0x173   : > { %v645_v52 = vadd.f32 %v644_v30, %v613_v48 }
 0x174   : > { %v716_v8 = vadd.f32 %v715_v56, %v685_v49 }
 0x175   : > { %v646_v50 = vadd.f32 %v645_v52, %v614_v46 }
 0x176   : > { %v717_v10 = vadd.f32 %v716_v8, %v686_v47 }
 0x177   : > { %v647_v37 = vadd.f32 %v646_v50, %v615_v32 }
 0x178   : > { %v718_v12 = vadd.f32 %v717_v10, %v687_v53 }
 0x179   : > { %v648_v7 = vadd.f32 %v647_v37, %v616_v34 }
 0x17a   : > { %v719_v58 = vadd.f32 %v718_v12, %v688_v51 }
 0x17b   : > { %v649_v9 = vadd.f32 %v648_v7, %v617_v36 }
 0x17c   : > { %v720_v16 = vadd.f32 %v719_v58, %v689_v57 }
 0x17d   : > { %v650_v60 = vadd.f32 %v649_v9, %v618_v6 }
 0x17e   : > { %v721_v18 = vadd.f32 %v720_v16, %v690_v55 }
 0x17f   : > { %v651_v15 = vadd.f32 %v650_v60, %v619_v54 }
 0x180   : > { %v722_v20 = vadd.f32 %v721_v18, %v691_v61 }
 0x181   : > { %v652_v40 = vadd.f32 %v651_v15, %v620_v11 }
 0x182   : > { %v723_v4 = vadd.f32 %v722_v20, %v692_v59 }
 0x183   : > { %v653_v17 = vadd.f32 %v652_v40, %v621_v14 }
 0x184   : > { %v724_v24 = vadd.f32 %v723_v4, %v693_v1 }
 0x185   : > { %v654_v62 = vadd.f32 %v653_v17, %v622_v38 }
 0x186   : > { %v725_v44 = vadd.f32 %v724_v24, %v694_v22 }
 0x187   : > { %v655_v21 = vadd.f32 %v654_v62, %v623_v0 }
 0x188   : > { %v726_v26 = vadd.f32 %v725_v44, %v695_v63 }
 0x189   : > { %v656_v23 = vadd.f32 %v655_v21, %v624_v19 }
 0x18a   : > { %v727_v27 = vadd.f32 %v726_v26, %v696_v2 }
 0x18b   : > { %v657_v25 = vrot.slane %v656_v23, 4 }
 0x18c   : > { %v728_v3 = vadd.f32 %v727_v27, %v697_v5 }
 0x18d   : > { %v658_v42 = vadd.f32 %v657_v25, %v656_v23 }
 0x18e   : > { %v729_v39 = vrot.slane %v728_v3, 4 }
 0x18f   : > { %v659_v41 = vrot.slane %v658_v42, 2 }
 0x190   : > { %v730_v46 = vadd.f32 %v729_v39, %v728_v3 }
 0x191   : > { %v660_v48 = vadd.f32 %v659_v41, %v658_v42 }
 0x192   : > { %v731_v45 = vrot.slane %v730_v46, 2 }
 0x193   : > { %v661_v13 = vrot.slane %v660_v48, 1 }
 0x194   : > { %v732_v31 = vadd.f32 %v731_v45, %v730_v46 }
 0x195   : > { %v662_v29 = vadd.f32 %v661_v13, %v660_v48 }
 0x197   : > { %v663_v30 = vadd.f32 %v662_v29, %v625_v28 }
 0x199   : > { %664 = vst [vmem:[#allocation4] sm:$0x1] %v663_v30 }
 0x19a   : > { %1047 = shalt.err (!%p1044_p11)
}
 0x19b   : > { %s1048_s25 = scalar_lea.hbm %s1455_s3, 16 }
 0x19c   : > { %p1049_p12 = scmp.ne.s32.totalorder %s1455_s3, %s1048_s25  ;;  %p1054_p1 = scmp.lt.u32.totalorder %s1048_s25, %s1455_s3 }
 0x19e   : > { %p1050_p13 = pnand %p1049_p12, %p990_p5 }
 0x1a0   : > { %p1051_p0 = pneg %p1050_p13 }
 0x1a2   : > { %p1056_p2 = pnand %p1054_p1, %p1051_p0 }
 0x1a4   : > { %1059 = shalt.err (!%p1056_p2)
}
 0x1a5   : > { %981 = dma.vmem_to_hbm [thread:$0]  (%p990_p5), %s756_s20, 16, %s1455_s3, [#allocation5]   ;;  %v733_v32 = vrot.slane %v732_v31, 1  ;;  %v665_v52 = vld [vmem:[#allocation6] sm:$0x1] }
 0x1a6   : > { %s1105_s6 = smov [#allocation6]  }
 0x1a7   : > { %s766_s7 = sshll.u32 %s1105_s6, 4  ;;  %v734_v43 = vadd.f32 %v733_v32, %v732_v31  ;;  %s767_s7 = int_to_ptr.vmem [resolvable:$true] %s766_s7 }
 0x1a8   : > { %s1060_s8 = scalar_lea.vmem %s767_s7, 16  ;;  %s1066_s9 = scalar_lea.vmem %s767_s7, 32 }
 0x1a9   : > { %v735_v33 = vadd.f32 %v734_v43, %v665_v52  ;;  %p1061_p3 = scmp.ne.s32.totalorder %s767_s7, %s1060_s8  ;;  %p1067_p7 = scmp.lt.s32.totalorder %s767_s7, %s767_s7 }
 0x1aa   : > { %p1068_p8 = scmp.lt.s32.totalorder %s1066_s9, %s1060_s8 }
 0x1ab   : > { %736 = vst [vmem:[#allocation6] sm:$0x1] %v735_v33  ;;  %p1062_p4 = pnand %p1061_p3, %p990_p5 }
 0x1ac   : > { %p1069_p9 = por %p1068_p8, %p1067_p7 }
 0x1ad   : > { %p1063_p6 = pneg %p1062_p4 }
 0x1af   : > { %p1070_p10 = pnand %p1069_p9, %p1063_p6 }
 0x1b1   : > { %1073 = shalt.err (!%p1070_p10)
}
 0x1b2   : > { %s1074_s12 = scalar_lea.hbm %s1456_s4, 16 }
 0x1b3   : > { %p1075_p11 = scmp.ne.s32.totalorder %s1456_s4, %s1074_s12  ;;  %p1080_p0 = scmp.lt.u32.totalorder %s1074_s12, %s1456_s4 }
 0x1b5   : > { %p1076_p12 = pnand %p1075_p11, %p990_p5 }
 0x1b7   : > { %p1077_p13 = pneg %p1076_p12 }
 0x1b9   : > { %p1082_p1 = pnand %p1080_p0, %p1077_p13 }
 0x1bb   : > { %1085 = shalt.err (!%p1082_p1)
}
 0x1bc   : > { %983 = dma.vmem_to_hbm [thread:$0]  (%p990_p5), %s767_s7, 16, %s1456_s4, [#allocation5]  }
 0x1bd   : > { %1091 = dma.done.wait (%p990_p5), [#allocation3], 16  }
 0x1be   : > { %1093 = vsyncadd (%p990_p5), [#allocation3], 4294967280 }
 0x1bf   : > { %1095 = dma.done.wait (%p990_p5), [#allocation5], 32  }
 0x1c0   : > { %1097 = vsyncadd (%p990_p5), [#allocation5], 4294967264 }
 0x1c1 PF: > { %s17_s15 = sadd.s32 1, %s1100_s15  }
 0x1c2   : > { %p14_p2 = scmp.ge.s32.totalorder %s17_s15, 4  }
 0x1c4   :  { %16 = sbr.rel (!%p14_p2) target bundleno = 2 (0x2), region = 75 }
 0x1cb   :  { %787 = vsyncpa [#allocation3], 1 }
 0x1cc   :  { %789 = vsyncpa [#allocation3 + $0x1], 1 }
 0x1cd   :  { %790 = vsyncpa [#allocation5], 1 }

</bundles_post_ra>
